<compile_context>
chip_gen: v7x
topology: tpu7x:2x2x1
jax: 0.10.0
libtpu: 0.0.40
codegen_flags: <defaults>
</compile_context>

<pallas_src>
import functools

import jax
import jax.numpy as jnp
from jax.experimental import pallas as pl
from jax.experimental.pallas import tpu as pltpu


def _round_up(x, m):
    return (x + m - 1) // m * m


def _tpu_vmem_capacity_bytes():
    try:
        return int(pltpu.get_tpu_info().vmem_capacity_bytes)
    except Exception:
        return 64 * 1024 * 1024  # conservative (v7x-sized) fallback


_ISSUE_UNROLL = 8  # row-gather descriptors hand-unrolled per loop iteration


def _gpt2_embed_kernel(ids_ref, pos_ref, tok_hbm, o_ref, tok_buf, sem,
                       *, ts, s_pad):
    """One grid step = one (batch row, sequence tile).

    ids_ref : SMEM [B * s_pad] int32   (scalar prefetch, flattened, pre-clipped)
    pos_ref : VMEM [s_pad, D]          (position table slice, resident)
    tok_hbm : HBM  [V, D]              (token table, gathered via manual DMA)
    o_ref   : VMEM [1, ts, D]          (output tile)
    tok_buf : VMEM [2, ts, D] scratch  (double buffer for gathered rows)
    sem     : DMA semaphores [2]
    """
    b = pl.program_id(0)
    sj = pl.program_id(1)
    n_sj = pl.num_programs(1)
    slot = sj % 2

    def issue_tile(tile_idx, slot_idx):
        base = b * s_pad + tile_idx * ts

        # Chunked issue loop: 8 descriptor builds per scf.for iteration keeps
        # the scalar/misc slots busy with useful work instead of loop control.
        @pl.loop(0, ts // _ISSUE_UNROLL)
        def _(c):
            r0 = pl.multiple_of(c * _ISSUE_UNROLL, _ISSUE_UNROLL)
            for u in range(_ISSUE_UNROLL):
                i = r0 + u
                tok = ids_ref[base + i]  # already clipped in the wrapper
                pltpu.make_async_copy(
                    tok_hbm.at[tok], tok_buf.at[slot_idx, i], sem.at[slot_idx]
                ).start()

    # First tile of this batch row has not been prefetched yet.
    @pl.when(sj == 0)
    def _():
        issue_tile(0, 0)

    # Prefetch the next sequence tile of the SAME batch row into the other
    # slot, overlapping its gather DMAs with this tile's wait + add + store.
    # (Kept within the batch row so "parallel" batch sharding stays correct.)
    @pl.when(sj + 1 < n_sj)
    def _():
        issue_tile(sj + 1, 1 - slot)

    # Aggregate wait for this tile's row gathers: every row copy of this slot
    # signals the same DMA semaphore, and DMA semaphores account in bytes, so a
    # single (ts, D)-shaped descriptor wait covers all ts row copies.
    pltpu.make_async_copy(
        tok_hbm.at[pl.ds(0, ts)], tok_buf.at[slot], sem.at[slot]
    ).wait()

    # Gathered token rows + resident position rows -> lane-dense (1, ts, D)
    # output store.
    start = pl.multiple_of(sj * ts, ts)
    o_ref[0, :, :] = tok_buf[slot] + pos_ref[pl.ds(start, ts), :]


def gpt2_embedding(ids, tok_table, pos_table, *, seq_tile=None):
    """ids: [B, S] int; tok_table: [V, D]; pos_table: [L, D], L >= S."""
    B, S = ids.shape
    V, D = tok_table.shape
    L, D2 = pos_table.shape
    assert D == D2, "embedding dims must match"
    assert S <= L, "sequence longer than max_seq_len"
    assert tok_table.dtype == pos_table.dtype, "table dtypes must match"

    vmem_cap = _tpu_vmem_capacity_bytes()
    if seq_tile is None:
        # Spend VMEM where it exists: bigger tiles on 128 MiB v5e/v6e, keep the
        # conservative choice on 64 MiB v7x.
        seq_tile = 512 if vmem_cap >= 100 * 1024 * 1024 else 256

    # Lane-dense output / row DMAs: pad D up to a multiple of 128.
    D_pad = _round_up(D, 128)

    # Sequence tile: multiple of the issue-unroll factor (and sublane-dense);
    # pad S up to a tile multiple.
    ts = seq_tile
    if S < ts:
        ts = _round_up(S, _ISSUE_UNROLL)
    ts = _round_up(ts, _ISSUE_UNROLL)
    s_pad = _round_up(S, ts)
    n_sj = s_pad // ts

    # Clip ids ONCE in the wrapper (hoisted out of the hot descriptor-issue
    # loop); pad with token id 0 (valid) so padded rows never issue OOB DMAs.
    ids32 = jnp.clip(ids.astype(jnp.int32), 0, V - 1)
    if s_pad != S:
        ids32 = jnp.pad(ids32, ((0, 0), (0, s_pad - S)))
    ids_flat = ids32.reshape(-1)  # 1-D scalar prefetch -> no 2-D SMEM padding

    pos = pos_table[:S]
    tok = tok_table
    if s_pad != S or D_pad != D:
        pos = jnp.pad(pos, ((0, s_pad - S), (0, D_pad - D)))
    if D_pad != D:
        tok = jnp.pad(tok, ((0, 0), (0, D_pad - D)))

    itemsize = jnp.dtype(tok.dtype).itemsize

    # VMEM budget: resident pos (x2 pipeline buffers) + output blocks (x2) +
    # tok double buffer, with 2x headroom, clamped to the chip's capacity.
    vmem_need = (2 * s_pad * D_pad + 2 * ts * D_pad + 2 * ts * D_pad) * itemsize
    vmem_limit = int(max(32 * 1024 * 1024,
                         min(2 * vmem_need, (vmem_cap * 3) // 4)))

    kernel = functools.partial(_gpt2_embed_kernel, ts=ts, s_pad=s_pad)

    grid_spec = pltpu.PrefetchScalarGridSpec(
        num_scalar_prefetch=1,
        grid=(B, n_sj),
        in_specs=[
            # Position table slice: constant block index -> DMA'd once, then
            # resident in VMEM for the whole grid (no per-batch re-fetch).
            pl.BlockSpec((s_pad, D_pad), lambda b, sj, ids: (0, 0)),
            # Token table stays in HBM; rows are gathered with manual DMAs.
            pl.BlockSpec(memory_space=pl.ANY),
        ],
        out_specs=pl.BlockSpec((1, ts, D_pad), lambda b, sj, ids: (b, sj, 0)),
        scratch_shapes=[
            pltpu.VMEM((2, ts, D_pad), tok.dtype),
            pltpu.SemaphoreType.DMA((2,)),
        ],
    )

    cost = pl.CostEstimate(
        flops=B * S * D,                       # one add per output element
        transcendentals=0,
        bytes_accessed=(2 * B * S * D + S * D) * itemsize + B * S * 4,
    )

    out = pl.pallas_call(
        kernel,
        out_shape=jax.ShapeDtypeStruct((B, s_pad, D_pad), tok.dtype),
        grid_spec=grid_spec,
        compiler_params=pltpu.CompilerParams(
            dimension_semantics=("parallel", "arbitrary"),
            vmem_limit_bytes=vmem_limit,
        ),
        cost_estimate=cost,
    )(ids_flat, pos, tok)

    if s_pad != S or D_pad != D:
        out = out[:, :S, :D]
    return out


if __name__ == "__main__":
    # Small, PyTorch-consistent shapes.
    vocab_size = 64
    embed_dim = 32
    max_seq_len = 16
    batch = 2
    seq = 8

    key = jax.random.PRNGKey(0)
    k_tok, k_pos, k_ids = jax.random.split(key, 3)

    # nn.Embedding default init: N(0, 1).
    tok_table = jax.random.normal(k_tok, (vocab_size, embed_dim), dtype=jnp.float32)
    pos_table = jax.random.normal(k_pos, (max_seq_len, embed_dim), dtype=jnp.float32)
    ids = jax.random.randint(k_ids, (batch, seq), 0, vocab_size, dtype=jnp.int32)

    out = jax.block_until_ready(gpt2_embedding(ids, tok_table, pos_table))
    ref = jnp.take(tok_table, ids, axis=0) + pos_table[jnp.arange(seq)][None, :, :]
    assert out.shape == (batch, seq, embed_dim)
    assert out.dtype == tok_table.dtype
    assert jnp.allclose(out, ref, atol=1e-6), "mismatch vs reference"

    # Also exercise the multi-tile / double-buffered gather path + aggregate
    # wait across tiles (forced TS=8 -> 2 sequence tiles per batch row).
    ids2 = jax.random.randint(jax.random.PRNGKey(1), (2, 16), 0, vocab_size,
                              dtype=jnp.int32)
    out2 = jax.block_until_ready(
        gpt2_embedding(ids2, tok_table, pos_table, seq_tile=8))
    ref2 = jnp.take(tok_table, ids2, axis=0) + pos_table[jnp.arange(16)][None, :, :]
    assert jnp.allclose(out2, ref2, atol=1e-6), "mismatch vs reference (tiled path)"

    print("KERNEL_OK")
</pallas_src>

<mosaic_0001>
module attributes {stable_mosaic.version = 11 : i64} {
  func.func @_gpt2_embed_kernel(%arg0: i32, %arg1: i32, %arg2: memref<16xi32, #tpu.memory_space<smem>>, %arg3: memref<8x128xf32, #tpu.memory_space<vmem>>, %arg4: memref<64x128xf32, #tpu.memory_space<any>>, %arg5: memref<1x8x128xf32, #tpu.memory_space<vmem>>, %arg6: memref<2x8x128xf32, #tpu.memory_space<vmem>>, %arg7: memref<2x!tpu.dma_semaphore, #tpu.memory_space<semaphore_mem>>) attributes {dimension_semantics = [#tpu.dimension_semantics<parallel>, #tpu.dimension_semantics<arbitrary>], iteration_bounds = array<i64: 2, 1>, scalar_prefetch = 1 : i64, scratch_operands = 2 : i64, tpu.core_type = #tpu.core_type<tc>, window_params = [{pipeline_mode = #tpu.pipeline_mode<synchronous>, transform_indices = @transform_0, window_bounds = array<i64: 8, 128>}, {}, {transform_indices = @transform_2, window_bounds = array<i64: 1, 8, 128>}]} {
    %c2_i32 = arith.constant 2 : i32
    %c0_i32 = arith.constant 0 : i32
    %0 = arith.cmpi eq, %c2_i32, %c0_i32 : i32
    %c1_i32 = arith.constant 1 : i32
    %1 = arith.select %0, %c1_i32, %c2_i32 : i32
    %2 = arith.remsi %arg1, %1 : i32
    %c0_i32_0 = arith.constant 0 : i32
    %3 = arith.cmpi ne, %2, %c0_i32_0 : i32
    %c0_i32_1 = arith.constant 0 : i32
    %4 = arith.cmpi slt, %2, %c0_i32_1 : i32
    %c0_i32_2 = arith.constant 0 : i32
    %5 = arith.cmpi slt, %1, %c0_i32_2 : i32
    %6 = arith.xori %4, %5 : i1
    %7 = arith.andi %6, %3 : i1
    %8 = arith.addi %2, %1 : i32
    %9 = arith.select %7, %8, %2 : i32
    %c0_i32_3 = arith.constant 0 : i32
    %10 = arith.cmpi eq, %arg1, %c0_i32_3 : i32
    %11 = arith.extui %10 : i1 to i32
    %c0_i32_4 = arith.constant 0 : i32
    %12 = arith.cmpi ne, %11, %c0_i32_4 : i32
    scf.if %12 {
      %c8_i32_17 = arith.constant 8 : i32
      %33 = arith.muli %arg0, %c8_i32_17 : i32
      %c0_i32_18 = arith.constant 0 : i32
      %34 = arith.addi %33, %c0_i32_18 : i32
      %c0_i32_19 = arith.constant 0 : i32
      %c1_i32_20 = arith.constant 1 : i32
      %35 = arith.muli %c0_i32_19, %c1_i32_20 : i32
      %c0_i32_21 = arith.constant 0 : i32
      %36 = arith.addi %c0_i32_21, %35 : i32
      %c8_i32_22 = arith.constant 8 : i32
      %37 = arith.muli %36, %c8_i32_22 : i32
      %38 = tpu.assume_multiple %37, 8 : i32
      %c0_i32_23 = arith.constant 0 : i32
      %39 = arith.addi %38, %c0_i32_23 : i32
      %40 = arith.addi %34, %39 : i32
      %41 = arith.index_cast %40 : i32 to index
      %42 = memref.load %arg2[%41] : memref<16xi32, #tpu.memory_space<smem>>
      %c0_i32_24 = arith.constant 0 : i32
      %c0_i32_25 = arith.constant 0 : i32
      %c0_i32_26 = arith.constant 0 : i32
      %43 = tpu.memref_slice %arg4[%42, %c0_i32_26] : memref<64x128xf32, #tpu.memory_space<any>> -> memref<1x128xf32, #tpu.memory_space<any>>
      %44 = tpu.memref_squeeze %43 : memref<1x128xf32, #tpu.memory_space<any>> -> memref<128xf32, #tpu.memory_space<any>>
      %c0_i32_27 = arith.constant 0 : i32
      %45 = tpu.memref_slice %arg6[%c0_i32_24, %39, %c0_i32_27] : memref<2x8x128xf32, #tpu.memory_space<vmem>> -> memref<1x1x128xf32, #tpu.memory_space<vmem>>
      %46 = tpu.memref_squeeze %45 : memref<1x1x128xf32, #tpu.memory_space<vmem>> -> memref<128xf32, #tpu.memory_space<vmem>>
      %47 = tpu.memref_slice %arg7[%c0_i32_25] : memref<2x!tpu.dma_semaphore, #tpu.memory_space<semaphore_mem>> -> memref<1x!tpu.dma_semaphore, #tpu.memory_space<semaphore_mem>>
      %48 = tpu.memref_squeeze %47 : memref<1x!tpu.dma_semaphore, #tpu.memory_space<semaphore_mem>> -> memref<!tpu.dma_semaphore, #tpu.memory_space<semaphore_mem>>
      tpu.enqueue_dma source(%44 : memref<128xf32, #tpu.memory_space<any>>) target(%46 : memref<128xf32, #tpu.memory_space<vmem>>) target_semaphore(%48 : memref<!tpu.dma_semaphore, #tpu.memory_space<semaphore_mem>>)
      %c1_i32_28 = arith.constant 1 : i32
      %49 = arith.addi %38, %c1_i32_28 : i32
      %50 = arith.addi %34, %49 : i32
      %51 = arith.index_cast %50 : i32 to index
      %52 = memref.load %arg2[%51] : memref<16xi32, #tpu.memory_space<smem>>
      %c0_i32_29 = arith.constant 0 : i32
      %c0_i32_30 = arith.constant 0 : i32
      %c0_i32_31 = arith.constant 0 : i32
      %53 = tpu.memref_slice %arg4[%52, %c0_i32_31] : memref<64x128xf32, #tpu.memory_space<any>> -> memref<1x128xf32, #tpu.memory_space<any>>
      %54 = tpu.memref_squeeze %53 : memref<1x128xf32, #tpu.memory_space<any>> -> memref<128xf32, #tpu.memory_space<any>>
      %c0_i32_32 = arith.constant 0 : i32
      %55 = tpu.memref_slice %arg6[%c0_i32_29, %49, %c0_i32_32] : memref<2x8x128xf32, #tpu.memory_space<vmem>> -> memref<1x1x128xf32, #tpu.memory_space<vmem>>
      %56 = tpu.memref_squeeze %55 : memref<1x1x128xf32, #tpu.memory_space<vmem>> -> memref<128xf32, #tpu.memory_space<vmem>>
      %57 = tpu.memref_slice %arg7[%c0_i32_30] : memref<2x!tpu.dma_semaphore, #tpu.memory_space<semaphore_mem>> -> memref<1x!tpu.dma_semaphore, #tpu.memory_space<semaphore_mem>>
      %58 = tpu.memref_squeeze %57 : memref<1x!tpu.dma_semaphore, #tpu.memory_space<semaphore_mem>> -> memref<!tpu.dma_semaphore, #tpu.memory_space<semaphore_mem>>
      tpu.enqueue_dma source(%54 : memref<128xf32, #tpu.memory_space<any>>) target(%56 : memref<128xf32, #tpu.memory_space<vmem>>) target_semaphore(%58 : memref<!tpu.dma_semaphore, #tpu.memory_space<semaphore_mem>>)
      %c2_i32_33 = arith.constant 2 : i32
      %59 = arith.addi %38, %c2_i32_33 : i32
      %60 = arith.addi %34, %59 : i32
      %61 = arith.index_cast %60 : i32 to index
      %62 = memref.load %arg2[%61] : memref<16xi32, #tpu.memory_space<smem>>
      %c0_i32_34 = arith.constant 0 : i32
      %c0_i32_35 = arith.constant 0 : i32
      %c0_i32_36 = arith.constant 0 : i32
      %63 = tpu.memref_slice %arg4[%62, %c0_i32_36] : memref<64x128xf32, #tpu.memory_space<any>> -> memref<1x128xf32, #tpu.memory_space<any>>
      %64 = tpu.memref_squeeze %63 : memref<1x128xf32, #tpu.memory_space<any>> -> memref<128xf32, #tpu.memory_space<any>>
      %c0_i32_37 = arith.constant 0 : i32
      %65 = tpu.memref_slice %arg6[%c0_i32_34, %59, %c0_i32_37] : memref<2x8x128xf32, #tpu.memory_space<vmem>> -> memref<1x1x128xf32, #tpu.memory_space<vmem>>
      %66 = tpu.memref_squeeze %65 : memref<1x1x128xf32, #tpu.memory_space<vmem>> -> memref<128xf32, #tpu.memory_space<vmem>>
      %67 = tpu.memref_slice %arg7[%c0_i32_35] : memref<2x!tpu.dma_semaphore, #tpu.memory_space<semaphore_mem>> -> memref<1x!tpu.dma_semaphore, #tpu.memory_space<semaphore_mem>>
      %68 = tpu.memref_squeeze %67 : memref<1x!tpu.dma_semaphore, #tpu.memory_space<semaphore_mem>> -> memref<!tpu.dma_semaphore, #tpu.memory_space<semaphore_mem>>
      tpu.enqueue_dma source(%64 : memref<128xf32, #tpu.memory_space<any>>) target(%66 : memref<128xf32, #tpu.memory_space<vmem>>) target_semaphore(%68 : memref<!tpu.dma_semaphore, #tpu.memory_space<semaphore_mem>>)
      %c3_i32 = arith.constant 3 : i32
      %69 = arith.addi %38, %c3_i32 : i32
      %70 = arith.addi %34, %69 : i32
      %71 = arith.index_cast %70 : i32 to index
      %72 = memref.load %arg2[%71] : memref<16xi32, #tpu.memory_space<smem>>
      %c0_i32_38 = arith.constant 0 : i32
      %c0_i32_39 = arith.constant 0 : i32
      %c0_i32_40 = arith.constant 0 : i32
      %73 = tpu.memref_slice %arg4[%72, %c0_i32_40] : memref<64x128xf32, #tpu.memory_space<any>> -> memref<1x128xf32, #tpu.memory_space<any>>
      %74 = tpu.memref_squeeze %73 : memref<1x128xf32, #tpu.memory_space<any>> -> memref<128xf32, #tpu.memory_space<any>>
      %c0_i32_41 = arith.constant 0 : i32
      %75 = tpu.memref_slice %arg6[%c0_i32_38, %69, %c0_i32_41] : memref<2x8x128xf32, #tpu.memory_space<vmem>> -> memref<1x1x128xf32, #tpu.memory_space<vmem>>
      %76 = tpu.memref_squeeze %75 : memref<1x1x128xf32, #tpu.memory_space<vmem>> -> memref<128xf32, #tpu.memory_space<vmem>>
      %77 = tpu.memref_slice %arg7[%c0_i32_39] : memref<2x!tpu.dma_semaphore, #tpu.memory_space<semaphore_mem>> -> memref<1x!tpu.dma_semaphore, #tpu.memory_space<semaphore_mem>>
      %78 = tpu.memref_squeeze %77 : memref<1x!tpu.dma_semaphore, #tpu.memory_space<semaphore_mem>> -> memref<!tpu.dma_semaphore, #tpu.memory_space<semaphore_mem>>
      tpu.enqueue_dma source(%74 : memref<128xf32, #tpu.memory_space<any>>) target(%76 : memref<128xf32, #tpu.memory_space<vmem>>) target_semaphore(%78 : memref<!tpu.dma_semaphore, #tpu.memory_space<semaphore_mem>>)
      %c4_i32 = arith.constant 4 : i32
      %79 = arith.addi %38, %c4_i32 : i32
      %80 = arith.addi %34, %79 : i32
      %81 = arith.index_cast %80 : i32 to index
      %82 = memref.load %arg2[%81] : memref<16xi32, #tpu.memory_space<smem>>
      %c0_i32_42 = arith.constant 0 : i32
      %c0_i32_43 = arith.constant 0 : i32
      %c0_i32_44 = arith.constant 0 : i32
      %83 = tpu.memref_slice %arg4[%82, %c0_i32_44] : memref<64x128xf32, #tpu.memory_space<any>> -> memref<1x128xf32, #tpu.memory_space<any>>
      %84 = tpu.memref_squeeze %83 : memref<1x128xf32, #tpu.memory_space<any>> -> memref<128xf32, #tpu.memory_space<any>>
      %c0_i32_45 = arith.constant 0 : i32
      %85 = tpu.memref_slice %arg6[%c0_i32_42, %79, %c0_i32_45] : memref<2x8x128xf32, #tpu.memory_space<vmem>> -> memref<1x1x128xf32, #tpu.memory_space<vmem>>
      %86 = tpu.memref_squeeze %85 : memref<1x1x128xf32, #tpu.memory_space<vmem>> -> memref<128xf32, #tpu.memory_space<vmem>>
      %87 = tpu.memref_slice %arg7[%c0_i32_43] : memref<2x!tpu.dma_semaphore, #tpu.memory_space<semaphore_mem>> -> memref<1x!tpu.dma_semaphore, #tpu.memory_space<semaphore_mem>>
      %88 = tpu.memref_squeeze %87 : memref<1x!tpu.dma_semaphore, #tpu.memory_space<semaphore_mem>> -> memref<!tpu.dma_semaphore, #tpu.memory_space<semaphore_mem>>
      tpu.enqueue_dma source(%84 : memref<128xf32, #tpu.memory_space<any>>) target(%86 : memref<128xf32, #tpu.memory_space<vmem>>) target_semaphore(%88 : memref<!tpu.dma_semaphore, #tpu.memory_space<semaphore_mem>>)
      %c5_i32 = arith.constant 5 : i32
      %89 = arith.addi %38, %c5_i32 : i32
      %90 = arith.addi %34, %89 : i32
      %91 = arith.index_cast %90 : i32 to index
      %92 = memref.load %arg2[%91] : memref<16xi32, #tpu.memory_space<smem>>
      %c0_i32_46 = arith.constant 0 : i32
      %c0_i32_47 = arith.constant 0 : i32
      %c0_i32_48 = arith.constant 0 : i32
      %93 = tpu.memref_slice %arg4[%92, %c0_i32_48] : memref<64x128xf32, #tpu.memory_space<any>> -> memref<1x128xf32, #tpu.memory_space<any>>
      %94 = tpu.memref_squeeze %93 : memref<1x128xf32, #tpu.memory_space<any>> -> memref<128xf32, #tpu.memory_space<any>>
      %c0_i32_49 = arith.constant 0 : i32
      %95 = tpu.memref_slice %arg6[%c0_i32_46, %89, %c0_i32_49] : memref<2x8x128xf32, #tpu.memory_space<vmem>> -> memref<1x1x128xf32, #tpu.memory_space<vmem>>
      %96 = tpu.memref_squeeze %95 : memref<1x1x128xf32, #tpu.memory_space<vmem>> -> memref<128xf32, #tpu.memory_space<vmem>>
      %97 = tpu.memref_slice %arg7[%c0_i32_47] : memref<2x!tpu.dma_semaphore, #tpu.memory_space<semaphore_mem>> -> memref<1x!tpu.dma_semaphore, #tpu.memory_space<semaphore_mem>>
      %98 = tpu.memref_squeeze %97 : memref<1x!tpu.dma_semaphore, #tpu.memory_space<semaphore_mem>> -> memref<!tpu.dma_semaphore, #tpu.memory_space<semaphore_mem>>
      tpu.enqueue_dma source(%94 : memref<128xf32, #tpu.memory_space<any>>) target(%96 : memref<128xf32, #tpu.memory_space<vmem>>) target_semaphore(%98 : memref<!tpu.dma_semaphore, #tpu.memory_space<semaphore_mem>>)
      %c6_i32 = arith.constant 6 : i32
      %99 = arith.addi %38, %c6_i32 : i32
      %100 = arith.addi %34, %99 : i32
      %101 = arith.index_cast %100 : i32 to index
      %102 = memref.load %arg2[%101] : memref<16xi32, #tpu.memory_space<smem>>
      %c0_i32_50 = arith.constant 0 : i32
      %c0_i32_51 = arith.constant 0 : i32
      %c0_i32_52 = arith.constant 0 : i32
      %103 = tpu.memref_slice %arg4[%102, %c0_i32_52] : memref<64x128xf32, #tpu.memory_space<any>> -> memref<1x128xf32, #tpu.memory_space<any>>
      %104 = tpu.memref_squeeze %103 : memref<1x128xf32, #tpu.memory_space<any>> -> memref<128xf32, #tpu.memory_space<any>>
      %c0_i32_53 = arith.constant 0 : i32
      %105 = tpu.memref_slice %arg6[%c0_i32_50, %99, %c0_i32_53] : memref<2x8x128xf32, #tpu.memory_space<vmem>> -> memref<1x1x128xf32, #tpu.memory_space<vmem>>
      %106 = tpu.memref_squeeze %105 : memref<1x1x128xf32, #tpu.memory_space<vmem>> -> memref<128xf32, #tpu.memory_space<vmem>>
      %107 = tpu.memref_slice %arg7[%c0_i32_51] : memref<2x!tpu.dma_semaphore, #tpu.memory_space<semaphore_mem>> -> memref<1x!tpu.dma_semaphore, #tpu.memory_space<semaphore_mem>>
      %108 = tpu.memref_squeeze %107 : memref<1x!tpu.dma_semaphore, #tpu.memory_space<semaphore_mem>> -> memref<!tpu.dma_semaphore, #tpu.memory_space<semaphore_mem>>
      tpu.enqueue_dma source(%104 : memref<128xf32, #tpu.memory_space<any>>) target(%106 : memref<128xf32, #tpu.memory_space<vmem>>) target_semaphore(%108 : memref<!tpu.dma_semaphore, #tpu.memory_space<semaphore_mem>>)
      %c7_i32 = arith.constant 7 : i32
      %109 = arith.addi %38, %c7_i32 : i32
      %110 = arith.addi %34, %109 : i32
      %111 = arith.index_cast %110 : i32 to index
      %112 = memref.load %arg2[%111] : memref<16xi32, #tpu.memory_space<smem>>
      %c0_i32_54 = arith.constant 0 : i32
      %c0_i32_55 = arith.constant 0 : i32
      %c0_i32_56 = arith.constant 0 : i32
      %113 = tpu.memref_slice %arg4[%112, %c0_i32_56] : memref<64x128xf32, #tpu.memory_space<any>> -> memref<1x128xf32, #tpu.memory_space<any>>
      %114 = tpu.memref_squeeze %113 : memref<1x128xf32, #tpu.memory_space<any>> -> memref<128xf32, #tpu.memory_space<any>>
      %c0_i32_57 = arith.constant 0 : i32
      %115 = tpu.memref_slice %arg6[%c0_i32_54, %109, %c0_i32_57] : memref<2x8x128xf32, #tpu.memory_space<vmem>> -> memref<1x1x128xf32, #tpu.memory_space<vmem>>
      %116 = tpu.memref_squeeze %115 : memref<1x1x128xf32, #tpu.memory_space<vmem>> -> memref<128xf32, #tpu.memory_space<vmem>>
      %117 = tpu.memref_slice %arg7[%c0_i32_55] : memref<2x!tpu.dma_semaphore, #tpu.memory_space<semaphore_mem>> -> memref<1x!tpu.dma_semaphore, #tpu.memory_space<semaphore_mem>>
      %118 = tpu.memref_squeeze %117 : memref<1x!tpu.dma_semaphore, #tpu.memory_space<semaphore_mem>> -> memref<!tpu.dma_semaphore, #tpu.memory_space<semaphore_mem>>
      tpu.enqueue_dma source(%114 : memref<128xf32, #tpu.memory_space<any>>) target(%116 : memref<128xf32, #tpu.memory_space<vmem>>) target_semaphore(%118 : memref<!tpu.dma_semaphore, #tpu.memory_space<semaphore_mem>>)
      %c1_i32_58 = arith.constant 1 : i32
    } else {
    }
    %c1_i32_5 = arith.constant 1 : i32
    %13 = arith.addi %arg1, %c1_i32_5 : i32
    %c1_i32_6 = arith.constant 1 : i32
    %14 = arith.cmpi slt, %13, %c1_i32_6 : i32
    %15 = arith.extui %14 : i1 to i32
    %c0_i32_7 = arith.constant 0 : i32
    %16 = arith.cmpi ne, %15, %c0_i32_7 : i32
    scf.if %16 {
      %c1_i32_17 = arith.constant 1 : i32
      %33 = arith.addi %arg1, %c1_i32_17 : i32
      %c1_i32_18 = arith.constant 1 : i32
      %34 = arith.subi %c1_i32_18, %9 : i32
      %c8_i32_19 = arith.constant 8 : i32
      %35 = arith.muli %arg0, %c8_i32_19 : i32
      %c8_i32_20 = arith.constant 8 : i32
      %36 = arith.muli %33, %c8_i32_20 : i32
      %37 = arith.addi %35, %36 : i32
      %c0_i32_21 = arith.constant 0 : i32
      %c1_i32_22 = arith.constant 1 : i32
      %38 = arith.muli %c0_i32_21, %c1_i32_22 : i32
      %c0_i32_23 = arith.constant 0 : i32
      %39 = arith.addi %c0_i32_23, %38 : i32
      %c8_i32_24 = arith.constant 8 : i32
      %40 = arith.muli %39, %c8_i32_24 : i32
      %41 = tpu.assume_multiple %40, 8 : i32
      %c0_i32_25 = arith.constant 0 : i32
      %42 = arith.addi %41, %c0_i32_25 : i32
      %43 = arith.addi %37, %42 : i32
      %44 = arith.index_cast %43 : i32 to index
      %45 = memref.load %arg2[%44] : memref<16xi32, #tpu.memory_space<smem>>
      %c0_i32_26 = arith.constant 0 : i32
      %46 = tpu.memref_slice %arg4[%45, %c0_i32_26] : memref<64x128xf32, #tpu.memory_space<any>> -> memref<1x128xf32, #tpu.memory_space<any>>
      %47 = tpu.memref_squeeze %46 : memref<1x128xf32, #tpu.memory_space<any>> -> memref<128xf32, #tpu.memory_space<any>>
      %c0_i32_27 = arith.constant 0 : i32
      %48 = tpu.memref_slice %arg6[%34, %42, %c0_i32_27] : memref<2x8x128xf32, #tpu.memory_space<vmem>> -> memref<1x1x128xf32, #tpu.memory_space<vmem>>
      %49 = tpu.memref_squeeze %48 : memref<1x1x128xf32, #tpu.memory_space<vmem>> -> memref<128xf32, #tpu.memory_space<vmem>>
      %50 = tpu.memref_slice %arg7[%34] : memref<2x!tpu.dma_semaphore, #tpu.memory_space<semaphore_mem>> -> memref<1x!tpu.dma_semaphore, #tpu.memory_space<semaphore_mem>>
      %51 = tpu.memref_squeeze %50 : memref<1x!tpu.dma_semaphore, #tpu.memory_space<semaphore_mem>> -> memref<!tpu.dma_semaphore, #tpu.memory_space<semaphore_mem>>
      tpu.enqueue_dma source(%47 : memref<128xf32, #tpu.memory_space<any>>) target(%49 : memref<128xf32, #tpu.memory_space<vmem>>) target_semaphore(%51 : memref<!tpu.dma_semaphore, #tpu.memory_space<semaphore_mem>>)
      %c1_i32_28 = arith.constant 1 : i32
      %52 = arith.addi %41, %c1_i32_28 : i32
      %53 = arith.addi %37, %52 : i32
      %54 = arith.index_cast %53 : i32 to index
      %55 = memref.load %arg2[%54] : memref<16xi32, #tpu.memory_space<smem>>
      %c0_i32_29 = arith.constant 0 : i32
      %56 = tpu.memref_slice %arg4[%55, %c0_i32_29] : memref<64x128xf32, #tpu.memory_space<any>> -> memref<1x128xf32, #tpu.memory_space<any>>
      %57 = tpu.memref_squeeze %56 : memref<1x128xf32, #tpu.memory_space<any>> -> memref<128xf32, #tpu.memory_space<any>>
      %c0_i32_30 = arith.constant 0 : i32
      %58 = tpu.memref_slice %arg6[%34, %52, %c0_i32_30] : memref<2x8x128xf32, #tpu.memory_space<vmem>> -> memref<1x1x128xf32, #tpu.memory_space<vmem>>
      %59 = tpu.memref_squeeze %58 : memref<1x1x128xf32, #tpu.memory_space<vmem>> -> memref<128xf32, #tpu.memory_space<vmem>>
      %60 = tpu.memref_slice %arg7[%34] : memref<2x!tpu.dma_semaphore, #tpu.memory_space<semaphore_mem>> -> memref<1x!tpu.dma_semaphore, #tpu.memory_space<semaphore_mem>>
      %61 = tpu.memref_squeeze %60 : memref<1x!tpu.dma_semaphore, #tpu.memory_space<semaphore_mem>> -> memref<!tpu.dma_semaphore, #tpu.memory_space<semaphore_mem>>
      tpu.enqueue_dma source(%57 : memref<128xf32, #tpu.memory_space<any>>) target(%59 : memref<128xf32, #tpu.memory_space<vmem>>) target_semaphore(%61 : memref<!tpu.dma_semaphore, #tpu.memory_space<semaphore_mem>>)
      %c2_i32_31 = arith.constant 2 : i32
      %62 = arith.addi %41, %c2_i32_31 : i32
      %63 = arith.addi %37, %62 : i32
      %64 = arith.index_cast %63 : i32 to index
      %65 = memref.load %arg2[%64] : memref<16xi32, #tpu.memory_space<smem>>
      %c0_i32_32 = arith.constant 0 : i32
      %66 = tpu.memref_slice %arg4[%65, %c0_i32_32] : memref<64x128xf32, #tpu.memory_space<any>> -> memref<1x128xf32, #tpu.memory_space<any>>
      %67 = tpu.memref_squeeze %66 : memref<1x128xf32, #tpu.memory_space<any>> -> memref<128xf32, #tpu.memory_space<any>>
      %c0_i32_33 = arith.constant 0 : i32
      %68 = tpu.memref_slice %arg6[%34, %62, %c0_i32_33] : memref<2x8x128xf32, #tpu.memory_space<vmem>> -> memref<1x1x128xf32, #tpu.memory_space<vmem>>
      %69 = tpu.memref_squeeze %68 : memref<1x1x128xf32, #tpu.memory_space<vmem>> -> memref<128xf32, #tpu.memory_space<vmem>>
      %70 = tpu.memref_slice %arg7[%34] : memref<2x!tpu.dma_semaphore, #tpu.memory_space<semaphore_mem>> -> memref<1x!tpu.dma_semaphore, #tpu.memory_space<semaphore_mem>>
      %71 = tpu.memref_squeeze %70 : memref<1x!tpu.dma_semaphore, #tpu.memory_space<semaphore_mem>> -> memref<!tpu.dma_semaphore, #tpu.memory_space<semaphore_mem>>
      tpu.enqueue_dma source(%67 : memref<128xf32, #tpu.memory_space<any>>) target(%69 : memref<128xf32, #tpu.memory_space<vmem>>) target_semaphore(%71 : memref<!tpu.dma_semaphore, #tpu.memory_space<semaphore_mem>>)
      %c3_i32 = arith.constant 3 : i32
      %72 = arith.addi %41, %c3_i32 : i32
      %73 = arith.addi %37, %72 : i32
      %74 = arith.index_cast %73 : i32 to index
      %75 = memref.load %arg2[%74] : memref<16xi32, #tpu.memory_space<smem>>
      %c0_i32_34 = arith.constant 0 : i32
      %76 = tpu.memref_slice %arg4[%75, %c0_i32_34] : memref<64x128xf32, #tpu.memory_space<any>> -> memref<1x128xf32, #tpu.memory_space<any>>
      %77 = tpu.memref_squeeze %76 : memref<1x128xf32, #tpu.memory_space<any>> -> memref<128xf32, #tpu.memory_space<any>>
      %c0_i32_35 = arith.constant 0 : i32
      %78 = tpu.memref_slice %arg6[%34, %72, %c0_i32_35] : memref<2x8x128xf32, #tpu.memory_space<vmem>> -> memref<1x1x128xf32, #tpu.memory_space<vmem>>
      %79 = tpu.memref_squeeze %78 : memref<1x1x128xf32, #tpu.memory_space<vmem>> -> memref<128xf32, #tpu.memory_space<vmem>>
      %80 = tpu.memref_slice %arg7[%34] : memref<2x!tpu.dma_semaphore, #tpu.memory_space<semaphore_mem>> -> memref<1x!tpu.dma_semaphore, #tpu.memory_space<semaphore_mem>>
      %81 = tpu.memref_squeeze %80 : memref<1x!tpu.dma_semaphore, #tpu.memory_space<semaphore_mem>> -> memref<!tpu.dma_semaphore, #tpu.memory_space<semaphore_mem>>
      tpu.enqueue_dma source(%77 : memref<128xf32, #tpu.memory_space<any>>) target(%79 : memref<128xf32, #tpu.memory_space<vmem>>) target_semaphore(%81 : memref<!tpu.dma_semaphore, #tpu.memory_space<semaphore_mem>>)
      %c4_i32 = arith.constant 4 : i32
      %82 = arith.addi %41, %c4_i32 : i32
      %83 = arith.addi %37, %82 : i32
      %84 = arith.index_cast %83 : i32 to index
      %85 = memref.load %arg2[%84] : memref<16xi32, #tpu.memory_space<smem>>
      %c0_i32_36 = arith.constant 0 : i32
      %86 = tpu.memref_slice %arg4[%85, %c0_i32_36] : memref<64x128xf32, #tpu.memory_space<any>> -> memref<1x128xf32, #tpu.memory_space<any>>
      %87 = tpu.memref_squeeze %86 : memref<1x128xf32, #tpu.memory_space<any>> -> memref<128xf32, #tpu.memory_space<any>>
      %c0_i32_37 = arith.constant 0 : i32
      %88 = tpu.memref_slice %arg6[%34, %82, %c0_i32_37] : memref<2x8x128xf32, #tpu.memory_space<vmem>> -> memref<1x1x128xf32, #tpu.memory_space<vmem>>
      %89 = tpu.memref_squeeze %88 : memref<1x1x128xf32, #tpu.memory_space<vmem>> -> memref<128xf32, #tpu.memory_space<vmem>>
      %90 = tpu.memref_slice %arg7[%34] : memref<2x!tpu.dma_semaphore, #tpu.memory_space<semaphore_mem>> -> memref<1x!tpu.dma_semaphore, #tpu.memory_space<semaphore_mem>>
      %91 = tpu.memref_squeeze %90 : memref<1x!tpu.dma_semaphore, #tpu.memory_space<semaphore_mem>> -> memref<!tpu.dma_semaphore, #tpu.memory_space<semaphore_mem>>
      tpu.enqueue_dma source(%87 : memref<128xf32, #tpu.memory_space<any>>) target(%89 : memref<128xf32, #tpu.memory_space<vmem>>) target_semaphore(%91 : memref<!tpu.dma_semaphore, #tpu.memory_space<semaphore_mem>>)
      %c5_i32 = arith.constant 5 : i32
      %92 = arith.addi %41, %c5_i32 : i32
      %93 = arith.addi %37, %92 : i32
      %94 = arith.index_cast %93 : i32 to index
      %95 = memref.load %arg2[%94] : memref<16xi32, #tpu.memory_space<smem>>
      %c0_i32_38 = arith.constant 0 : i32
      %96 = tpu.memref_slice %arg4[%95, %c0_i32_38] : memref<64x128xf32, #tpu.memory_space<any>> -> memref<1x128xf32, #tpu.memory_space<any>>
      %97 = tpu.memref_squeeze %96 : memref<1x128xf32, #tpu.memory_space<any>> -> memref<128xf32, #tpu.memory_space<any>>
      %c0_i32_39 = arith.constant 0 : i32
      %98 = tpu.memref_slice %arg6[%34, %92, %c0_i32_39] : memref<2x8x128xf32, #tpu.memory_space<vmem>> -> memref<1x1x128xf32, #tpu.memory_space<vmem>>
      %99 = tpu.memref_squeeze %98 : memref<1x1x128xf32, #tpu.memory_space<vmem>> -> memref<128xf32, #tpu.memory_space<vmem>>
      %100 = tpu.memref_slice %arg7[%34] : memref<2x!tpu.dma_semaphore, #tpu.memory_space<semaphore_mem>> -> memref<1x!tpu.dma_semaphore, #tpu.memory_space<semaphore_mem>>
      %101 = tpu.memref_squeeze %100 : memref<1x!tpu.dma_semaphore, #tpu.memory_space<semaphore_mem>> -> memref<!tpu.dma_semaphore, #tpu.memory_space<semaphore_mem>>
      tpu.enqueue_dma source(%97 : memref<128xf32, #tpu.memory_space<any>>) target(%99 : memref<128xf32, #tpu.memory_space<vmem>>) target_semaphore(%101 : memref<!tpu.dma_semaphore, #tpu.memory_space<semaphore_mem>>)
      %c6_i32 = arith.constant 6 : i32
      %102 = arith.addi %41, %c6_i32 : i32
      %103 = arith.addi %37, %102 : i32
      %104 = arith.index_cast %103 : i32 to index
      %105 = memref.load %arg2[%104] : memref<16xi32, #tpu.memory_space<smem>>
      %c0_i32_40 = arith.constant 0 : i32
      %106 = tpu.memref_slice %arg4[%105, %c0_i32_40] : memref<64x128xf32, #tpu.memory_space<any>> -> memref<1x128xf32, #tpu.memory_space<any>>
      %107 = tpu.memref_squeeze %106 : memref<1x128xf32, #tpu.memory_space<any>> -> memref<128xf32, #tpu.memory_space<any>>
      %c0_i32_41 = arith.constant 0 : i32
      %108 = tpu.memref_slice %arg6[%34, %102, %c0_i32_41] : memref<2x8x128xf32, #tpu.memory_space<vmem>> -> memref<1x1x128xf32, #tpu.memory_space<vmem>>
      %109 = tpu.memref_squeeze %108 : memref<1x1x128xf32, #tpu.memory_space<vmem>> -> memref<128xf32, #tpu.memory_space<vmem>>
      %110 = tpu.memref_slice %arg7[%34] : memref<2x!tpu.dma_semaphore, #tpu.memory_space<semaphore_mem>> -> memref<1x!tpu.dma_semaphore, #tpu.memory_space<semaphore_mem>>
      %111 = tpu.memref_squeeze %110 : memref<1x!tpu.dma_semaphore, #tpu.memory_space<semaphore_mem>> -> memref<!tpu.dma_semaphore, #tpu.memory_space<semaphore_mem>>
      tpu.enqueue_dma source(%107 : memref<128xf32, #tpu.memory_space<any>>) target(%109 : memref<128xf32, #tpu.memory_space<vmem>>) target_semaphore(%111 : memref<!tpu.dma_semaphore, #tpu.memory_space<semaphore_mem>>)
      %c7_i32 = arith.constant 7 : i32
      %112 = arith.addi %41, %c7_i32 : i32
      %113 = arith.addi %37, %112 : i32
      %114 = arith.index_cast %113 : i32 to index
      %115 = memref.load %arg2[%114] : memref<16xi32, #tpu.memory_space<smem>>
      %c0_i32_42 = arith.constant 0 : i32
      %116 = tpu.memref_slice %arg4[%115, %c0_i32_42] : memref<64x128xf32, #tpu.memory_space<any>> -> memref<1x128xf32, #tpu.memory_space<any>>
      %117 = tpu.memref_squeeze %116 : memref<1x128xf32, #tpu.memory_space<any>> -> memref<128xf32, #tpu.memory_space<any>>
      %c0_i32_43 = arith.constant 0 : i32
      %118 = tpu.memref_slice %arg6[%34, %112, %c0_i32_43] : memref<2x8x128xf32, #tpu.memory_space<vmem>> -> memref<1x1x128xf32, #tpu.memory_space<vmem>>
      %119 = tpu.memref_squeeze %118 : memref<1x1x128xf32, #tpu.memory_space<vmem>> -> memref<128xf32, #tpu.memory_space<vmem>>
      %120 = tpu.memref_slice %arg7[%34] : memref<2x!tpu.dma_semaphore, #tpu.memory_space<semaphore_mem>> -> memref<1x!tpu.dma_semaphore, #tpu.memory_space<semaphore_mem>>
      %121 = tpu.memref_squeeze %120 : memref<1x!tpu.dma_semaphore, #tpu.memory_space<semaphore_mem>> -> memref<!tpu.dma_semaphore, #tpu.memory_space<semaphore_mem>>
      tpu.enqueue_dma source(%117 : memref<128xf32, #tpu.memory_space<any>>) target(%119 : memref<128xf32, #tpu.memory_space<vmem>>) target_semaphore(%121 : memref<!tpu.dma_semaphore, #tpu.memory_space<semaphore_mem>>)
      %c1_i32_44 = arith.constant 1 : i32
    } else {
    }
    %c0_i32_8 = arith.constant 0 : i32
    %c0_i32_9 = arith.constant 0 : i32
    %17 = tpu.memref_slice %arg4[%c0_i32_8, %c0_i32_9] : memref<64x128xf32, #tpu.memory_space<any>> -> memref<8x128xf32, #tpu.memory_space<any>>
    %c0_i32_10 = arith.constant 0 : i32
    %c0_i32_11 = arith.constant 0 : i32
    %18 = tpu.memref_slice %arg6[%9, %c0_i32_10, %c0_i32_11] : memref<2x8x128xf32, #tpu.memory_space<vmem>> -> memref<1x8x128xf32, #tpu.memory_space<vmem>>
    %19 = tpu.memref_squeeze %18 : memref<1x8x128xf32, #tpu.memory_space<vmem>> -> memref<8x128xf32, #tpu.memory_space<vmem>>
    %20 = tpu.memref_slice %arg7[%9] : memref<2x!tpu.dma_semaphore, #tpu.memory_space<semaphore_mem>> -> memref<1x!tpu.dma_semaphore, #tpu.memory_space<semaphore_mem>>
    %21 = tpu.memref_squeeze %20 : memref<1x!tpu.dma_semaphore, #tpu.memory_space<semaphore_mem>> -> memref<!tpu.dma_semaphore, #tpu.memory_space<semaphore_mem>>
    tpu.wait_dma2 semaphore(%21 : memref<!tpu.dma_semaphore, #tpu.memory_space<semaphore_mem>>) src(%17 : memref<8x128xf32, #tpu.memory_space<any>>) dst(%19 : memref<8x128xf32, #tpu.memory_space<vmem>>)
    %c8_i32 = arith.constant 8 : i32
    %22 = arith.muli %arg1, %c8_i32 : i32
    %23 = tpu.assume_multiple %22, 8 : i32
    %24 = arith.index_cast %9 : i32 to index
    %c0 = arith.constant 0 : index
    %c0_12 = arith.constant 0 : index
    %25 = vector.load %arg6[%24, %c0, %c0_12] : memref<2x8x128xf32, #tpu.memory_space<vmem>>, vector<1x8x128xf32>
    %26 = vector.shape_cast %25 : vector<1x8x128xf32> to vector<8x128xf32>
    %27 = arith.index_cast %23 : i32 to index
    %c0_13 = arith.constant 0 : index
    %28 = vector.load %arg3[%27, %c0_13] : memref<8x128xf32, #tpu.memory_space<vmem>>, vector<8x128xf32>
    %29 = arith.addf %26, %28 : vector<8x128xf32>
    %c0_14 = arith.constant 0 : index
    %c0_15 = arith.constant 0 : index
    %c0_16 = arith.constant 0 : index
    %30 = vector.load %arg5[%c0_14, %c0_15, %c0_16] : memref<1x8x128xf32, #tpu.memory_space<vmem>>, vector<1x8x128xf32>
    %31 = vector.shape_cast %30 : vector<1x8x128xf32> to vector<8x128xf32>
    %32 = vector.shape_cast %29 : vector<8x128xf32> to vector<1x8x128xf32>
    tpu.vector_store %arg5[%c0_14, %c0_15, %c0_16], %32 {strides = array<i32>} : memref<1x8x128xf32, #tpu.memory_space<vmem>>, vector<1x8x128xf32>,
    return
  }
  func.func @transform_0(%arg0: i32, %arg1: i32, %arg2: memref<16xi32, #tpu.memory_space<smem>>) -> (i32, i32) {
    %c0_i32 = arith.constant 0 : i32
    %c0_i32_0 = arith.constant 0 : i32
    %c0_i32_1 = arith.constant 0 : i32
    return %c0_i32, %c0_i32_0 : i32, i32
  }
  func.func @transform_2(%arg0: i32, %arg1: i32, %arg2: memref<16xi32, #tpu.memory_space<smem>>) -> (i32, i32, i32) {
    %c0_i32 = arith.constant 0 : i32
    %c0_i32_0 = arith.constant 0 : i32
    return %arg0, %arg1, %c0_i32 : i32, i32, i32
  }
}

</mosaic_0001>

<bundles_post_ra>
// kernel: tpu_custom_call.1
= control target key start
LH: loop header
LB: loop body
LE: loop exit
PB: predicated region body
PF: predicated region fallthrough
CT: control target
= control target key end

     0   :  { %s1362_s0 = inlined_call_operand.hbm [shape: s32[16], index: 0, kind: input, shape index: {}]   ;;  %s1363_s1 = inlined_call_operand.hbm [shape: f32[8,128], index: 1, kind: input, shape index: {}]   ;;  %s1364_s2 = inlined_call_operand.hbm [shape: f32[64,128], index: 2, kind: input, shape index: {}]   ;;  %s1365_s3 = inlined_call_operand.hbm [shape: f32[2,8,128], index: 3, kind: output, shape index: {}]  }
   0x1   :  { %1373 = sst [smem:[#allocation50_spill]] %s1363_s1  ;;  %s722_s14 = scalar_lea.hbm %s1362_s0, 16 }
   0x2   :  { %p723_p0 = scmp.ne.s32.totalorder %s1362_s0, %s722_s14  ;;  %p726_p1 = scmp.lt.u32.totalorder %s722_s14, %s1362_s0 }
   0x4   :  { %p728_p2 = pnand %p726_p1, %p723_p0 }
   0x6   :  { %731 = shalt.err (!%p728_p2)  }
   0x7   :  { %s1040_s19 = smov [#allocation5]  }
   0x8   :  { %9 = dma.hbm_to_smem %s1362_s0, 16, %s1040_s19, [#allocation4] }
   0x9   :  { %1004 = dma.done.wait [#allocation4], 16 }
   0xa   :  { %1005 = vsyncadd [#allocation4], 4294967280 }
   0xb   :  { %11 = sfence }
   0xc   :  { %12 = vsyncpa [#allocation7], 0 }
   0xd   :  { %13 = vsyncpa [#allocation8], 0 }
   0xe   :  { %15 = vsyncpa [#allocation8 + $0x1], 0  ;;  %s1083_s22 = smov 0   ;;  %s1085_s23 = smov 0  }
   0xf   :  { %s1087_s24 = smov 0   ;;  %s1089_s25 = smov 0  }
  0x10   :  { %s1091_s26 = smov 0   ;;  %s1093_s27 = smov 0  }
  0x11 LB: > { %1374 = sst [smem:[#allocation48_spill]] %s1034_s26  ;;  %s609_s0 = sadd.s32 4294967295, %s1038_s27   ;;  %s1038_s27 = sphi %s1093_s27, %s21_s27   ;;  %s1034_s26 = sphi %s1091_s26, %s1388_s26   ;;  %s1030_s25 = sphi %s1089_s25, %s1387_s25   ;;  %s1026_s24 = sphi %s1087_s24, %s1391_s24   ;;  %s1022_s23 = sphi %s1085_s23, %s1390_s23   ;;  %s1018_s22 = sphi %s1083_s22, %s1389_s22  }
  0x12   : > { %s610_s28 = sadd.s32 4294967294, %s1038_s27   ;;  %s33_s29 = sadd.s32 1, %s1034_s26 }
  0x13   : > { %s63_s30 = sadd.s32 1, %s1026_s24  ;;  %p35_p3 = scmp.ge.s32.totalorder %s33_s29, 2 }
  0x14   : > { %p73_p4 = scmp.ne.s32.totalorder %s1026_s24, %s1022_s23  ;;  %p74_p5 = scmp.eq.s32.totalorder %s609_s0, 1 }
  0x15   : > { %p79_p6 = scmp.ne.s32.totalorder %s1022_s23, %s1018_s22  ;;  %s1393_s29 = smov (%p35_p3, %s33_s29), 0 }
  0x16   : > { %1375 = sst [smem:[#allocation49_spill]] %s1393_s29  ;;  %p1123_p7 = por %p74_p5, %p73_p4 }
  0x17   : > { %p80_p8 = scmp.eq.s32.totalorder %s610_s28, 1  ;;  %s58_s5 = ssub.s32 %s1034_s26, %s1393_s29 }
  0x18   : > { %s1376_s4 = scalar_select %p1123_p7, 1, 0 }
  0x19   : > { %p611_p9 = scmp.ge.s32.totalorder %s1038_s27, 1  ;;  %p61_p10 = scmp.eq.s32.totalorder %s58_s5, 0 }
  0x1a   : > { %p1130_p11 = por %p80_p8, %p79_p6  ;;  %p87_p12 = scmp.lt.s32.totalorder %s1038_s27, 3 }
  0x1b   : > { %s1136_s7 = scalar_select %p61_p10, %s1026_s24, %s63_s30  }
  0x1c   : > { %s1377_s6 = scalar_select %p1130_p11, 1, 0 }
  0x1d   : > { %p1138_p13 = pnand %p611_p9, %p87_p12  ;;  %p1142_p0 = scmp.eq.s32.totalorder %s609_s0, 0 }
  0x1e   : > { %s1041_s10 = smov [#allocation6]   ;;  %s1381_s1 = sld [smem:[#allocation50_spill]] }
  0x1f   : > { %s1378_s8 = scalar_select %p1138_p13, 1, 0 }
  0x20   : > { %s1379_s9 = scalar_select %p1142_p0, 1, 0 }
  0x21   : > { %p653_p1 = pneg %p1138_p13  ;;  %s100_s11 = sshll.u32 %s1041_s10, 4  ;;  %s101_s11 = int_to_ptr.vmem [resolvable:$true] %s100_s11 }
  0x23   : > { %p1150_p2 = pnand %p1142_p0, %p653_p1 }
  0x24   : > { %s732_s15 = scalar_lea.hbm %s1381_s1, 128 }
  0x25   : > { %p733_p3 = scmp.ne.s32.totalorder %s1381_s1, %s732_s15  ;;  %p734_p4 = pneg %p1150_p2 }
  0x26   : > { %p739_p8 = scmp.lt.u32.totalorder %s732_s15, %s1381_s1 }
  0x27   : > { %p735_p5 = pnand %p734_p4, %p733_p3 }
  0x29   : > { %p736_p6 = pneg %p735_p5 }
  0x2b   : > { %p741_p9 = pnand %p739_p8, %p736_p6 }
  0x2d   : > { %744 = shalt.err (!%p741_p9)
}
  0x2e   : > { %s745_s20 = scalar_lea.vmem %s101_s11, 128  ;;  %p753_p11 = scmp.lt.s32.totalorder %s101_s11, %s101_s11 }
  0x2f   : > { %p746_p10 = scmp.ne.s32.totalorder %s101_s11, %s745_s20  ;;  %p754_p7 = scmp.lt.s32.totalorder %s745_s20, %s745_s20 }
  0x31   : > { %p748_p12 = pnand %p746_p10, %p734_p4  ;;  %p755_p0 = por %p754_p7, %p753_p11 }
  0x33   : > { %p749_p1 = pneg %p748_p12 }
  0x35   : > { %p756_p13 = pnand %p755_p0, %p749_p1 }
  0x37   : > { %759 = shalt.err (!%p756_p13)
}
  0x38   : > { %656 = dma.hbm_to_vmem [thread:$0]  (!%p1150_p2), %s1381_s1, 128, %s101_s11, [#allocation7]  }
  0x39   : > { %p1382_p3 = scmp.ne.s32.totalorder %s1378_s8, 0 }
  0x3a   : > { %p1383_p5 = scmp.ne.s32.totalorder (!%p1382_p3), %s1379_s9, 0 }
  0x3b   : > { %113 = sbr.rel (%p1382_p3) target bundleno = 276 (0x114), region = 24 }
  0x42   : > { %1007 = dma.done.wait (%p1383_p5), [#allocation7], 128  }
  0x43   : > { %1009 = vsyncadd (%p1383_p5), [#allocation7], 4294967168  ;;  %s1370_s28 = sand.u32 1, %s1022_s23   ;;  %s1178_s30 = sshll.u32 %s1030_s25, 3 }
  0x44   : > { %s1182_s5 = sshll.u32 %s1370_s28, 3  ;;  %s146_s8 = sld [smem:[#allocation5 + %s1178_s30]] }
  0x45   : > { %s1042_s10 = smov [#allocation2]   ;;  %s161_s12 = sadd.s32 1, %s1178_s30 }
  0x46   : > { %s156_s11 = sshll.u32 %s1042_s10, 4  ;;  %s1188_s9 = sld [smem:[#allocation5 + %s161_s12]]  ;;  %s1186_s11 = int_to_ptr.vmem [resolvable:$true] %s156_s11 }
  0x47   : > { %s178_s13 = sadd.s32 2, %s1178_s30  ;;  %s1043_s14 = smov [#allocation2 + $0x1]  }
  0x48   : > { %s173_s15 = sshll.u32 %s1043_s14, 4  ;;  %s1191_s16 = sld [smem:[#allocation5 + %s178_s13]]  ;;  %s1193_s15 = int_to_ptr.vmem [resolvable:$true] %s173_s15 }
  0x49   : > { %s1201_s28 = scalar_lea.hbm %s1364_s2, 1024 }
  0x4a   : > { %s617_s17 = sshll.u32 %s146_s8, 4 }
  0x4b   : > { %s148_s20 = scalar_lea.hbm %s1364_s2, %s617_s17 }
  0x4c   : > { %s760_s21 = scalar_lea.hbm %s148_s20, 16  ;;  %p763_p11 = scmp.lt.u32.totalorder %s148_s20, %s1364_s2 }
  0x4d   : > { %p761_p7 = scmp.ne.s32.totalorder %s148_s20, %s760_s21  ;;  %p764_p13 = scmp.lt.u32.totalorder %s1201_s28, %s760_s21 }
  0x4e   : > { %p766_p2 = scmp.lt.u32.totalorder %s760_s21, %s148_s20 }
  0x4f   : > { %p765_p0 = por %p764_p13, %p763_p11 }
  0x51   : > { %p767_p4 = por %p766_p2, %p765_p0 }
  0x53   : > { %p768_p6 = pnand %p767_p4, %p761_p7 }
  0x55   : > { %771 = shalt.err (!%p768_p6)  }
  0x56   : > { %s772_s8 = scalar_lea.vmem %s1186_s11, 16  ;;  %s1210_s13 = scalar_lea.vmem %s1186_s11, 256 }
  0x57   : > { %p773_p8 = scmp.ne.s32.totalorder %s1186_s11, %s772_s8  ;;  %p777_p9 = scmp.lt.s32.totalorder %s1186_s11, %s1186_s11 }
  0x58   : > { %p778_p10 = scmp.lt.s32.totalorder %s1210_s13, %s772_s8 }
  0x5a   : > { %p779_p12 = por %p778_p10, %p777_p9 }
  0x5c   : > { %p780_p1 = pnand %p779_p12, %p773_p8 }
  0x5e   : > { %783 = shalt.err (!%p780_p1)  }
  0x5f   : > { %159 = dma.hbm_to_vmem [thread:$0]  %s148_s20, 16, %s1186_s11, [#allocation3] }
  0x60   : > { %s618_s1 = sshll.u32 %s1188_s9, 4  ;;  %s1044_s14 = smov [#allocation2 + $0x2]  }
  0x61   : > { %s190_s17 = sshll.u32 %s1044_s14, 4  ;;  %s164_s21 = scalar_lea.hbm %s1364_s2, %s618_s1  ;;  %s1220_s17 = int_to_ptr.vmem [resolvable:$true] %s190_s17 }
  0x62   : > { %s784_s0 = scalar_lea.hbm %s164_s21, 16  ;;  %p787_p5 = scmp.lt.u32.totalorder %s164_s21, %s1364_s2 }
  0x63   : > { %p785_p3 = scmp.ne.s32.totalorder %s164_s21, %s784_s0  ;;  %p788_p7 = scmp.lt.u32.totalorder %s1201_s28, %s784_s0 }
  0x64   : > { %p790_p13 = scmp.lt.u32.totalorder %s784_s0, %s164_s21 }
  0x65   : > { %p789_p11 = por %p788_p7, %p787_p5 }
  0x67   : > { %p791_p0 = por %p790_p13, %p789_p11 }
  0x69   : > { %p792_p2 = pnand %p791_p0, %p785_p3 }
  0x6b   : > { %795 = shalt.err (!%p792_p2)  }
  0x6c   : > { %s796_s9 = scalar_lea.vmem %s1193_s15, 16  ;;  %p801_p6 = scmp.lt.s32.totalorder %s1193_s15, %s1186_s11 }
  0x6d   : > { %p797_p4 = scmp.ne.s32.totalorder %s1193_s15, %s796_s9  ;;  %p802_p8 = scmp.lt.s32.totalorder %s1210_s13, %s796_s9 }
  0x6f   : > { %p803_p9 = por %p802_p8, %p801_p6 }
  0x71   : > { %p804_p10 = pnand %p803_p9, %p797_p4 }
  0x73   : > { %807 = shalt.err (!%p804_p10)  }
  0x74   : > { %176 = dma.hbm_to_vmem [thread:$0]  %s164_s21, 16, %s1193_s15, [#allocation3] }
  0x75   : > { %s619_s20 = sshll.u32 %s1191_s16, 4  ;;  %s195_s8 = sadd.s32 3, %s1178_s30 }
  0x76   : > { %s181_s18 = scalar_lea.hbm %s1364_s2, %s619_s20  ;;  %s1237_s19 = sld [smem:[#allocation5 + %s195_s8]] }
  0x77   : > { %s808_s0 = scalar_lea.hbm %s181_s18, 16  ;;  %p811_p1 = scmp.lt.u32.totalorder %s181_s18, %s1364_s2 }
  0x78   : > { %p809_p12 = scmp.ne.s32.totalorder %s181_s18, %s808_s0  ;;  %p812_p3 = scmp.lt.u32.totalorder %s1201_s28, %s808_s0 }
  0x79   : > { %p814_p7 = scmp.lt.u32.totalorder %s808_s0, %s181_s18 }
  0x7a   : > { %p813_p5 = por %p812_p3, %p811_p1 }
  0x7c   : > { %p815_p11 = por %p814_p7, %p813_p5 }
  0x7e   : > { %p816_p13 = pnand %p815_p11, %p809_p12 }
  0x80   : > { %819 = shalt.err (!%p816_p13)  }
  0x81   : > { %s820_s15 = scalar_lea.vmem %s1220_s17, 16  ;;  %p825_p2 = scmp.lt.s32.totalorder %s1220_s17, %s1186_s11 }
  0x82   : > { %p821_p0 = scmp.ne.s32.totalorder %s1220_s17, %s820_s15  ;;  %p826_p4 = scmp.lt.s32.totalorder %s1210_s13, %s820_s15 }
  0x84   : > { %p827_p6 = por %p826_p4, %p825_p2 }
  0x86   : > { %p828_p8 = pnand %p827_p6, %p821_p0 }
  0x88   : > { %831 = shalt.err (!%p828_p8)  }
  0x89   : > { %193 = dma.hbm_to_vmem [thread:$0]  %s181_s18, 16, %s1220_s17, [#allocation3] }
  0x8a   : > { %s212_s16 = sadd.s32 4, %s1178_s30  ;;  %s1045_s21 = smov [#allocation2 + $0x3]  }
  0x8b   : > { %s207_s9 = sshll.u32 %s1045_s21, 4  ;;  %s213_s20 = sld [smem:[#allocation5 + %s212_s16]]  ;;  %s208_s9 = int_to_ptr.vmem [resolvable:$true] %s207_s9 }
  0x8c   : > { %s1046_s8 = smov [#allocation2 + $0x4]   ;;  %s229_s14 = sadd.s32 5, %s1178_s30 }
  0x8d   : > { %s224_s1 = sshll.u32 %s1046_s8, 4  ;;  %s620_s0 = sshll.u32 %s1237_s19, 4  ;;  %s1252_s1 = int_to_ptr.vmem [resolvable:$true] %s224_s1 }
  0x8e   : > { %s198_s15 = scalar_lea.hbm %s1364_s2, %s620_s0  ;;  %s1257_s29 = sld [smem:[#allocation5 + %s229_s14]] }
  0x8f   : > { %s832_s26 = scalar_lea.hbm %s198_s15, 16  ;;  %p835_p10 = scmp.lt.u32.totalorder %s198_s15, %s1364_s2 }
  0x90   : > { %p833_p9 = scmp.ne.s32.totalorder %s198_s15, %s832_s26  ;;  %p836_p12 = scmp.lt.u32.totalorder %s1201_s28, %s832_s26 }
  0x91   : > { %p838_p3 = scmp.lt.u32.totalorder %s832_s26, %s198_s15 }
  0x92   : > { %p837_p1 = por %p836_p12, %p835_p10 }
  0x94   : > { %p839_p5 = por %p838_p3, %p837_p1 }
  0x96   : > { %p840_p7 = pnand %p839_p5, %p833_p9 }
  0x98   : > { %843 = shalt.err (!%p840_p7)  }
  0x99   : > { %s844_s19 = scalar_lea.vmem %s208_s9, 16  ;;  %p849_p13 = scmp.lt.s32.totalorder %s208_s9, %s1186_s11 }
  0x9a   : > { %p845_p11 = scmp.ne.s32.totalorder %s208_s9, %s844_s19  ;;  %p850_p0 = scmp.lt.s32.totalorder %s1210_s13, %s844_s19 }
  0x9c   : > { %p851_p2 = por %p850_p0, %p849_p13 }
  0x9e   : > { %p852_p4 = pnand %p851_p2, %p845_p11 }
  0xa0   : > { %855 = shalt.err (!%p852_p4)  }
  0xa1   : > { %210 = dma.hbm_to_vmem [thread:$0]  %s198_s15, 16, %s208_s9, [#allocation3] }
  0xa2   : > { %s621_s16 = sshll.u32 %s213_s20, 4  ;;  %s1047_s26 = smov [#allocation2 + $0x5]  }
  0xa3   : > { %s215_s14 = scalar_lea.hbm %s1364_s2, %s621_s16  ;;  %s241_s0 = sshll.u32 %s1047_s26, 4  ;;  %s242_s0 = int_to_ptr.vmem [resolvable:$true] %s241_s0 }
  0xa4   : > { %s856_s10 = scalar_lea.hbm %s215_s14, 16  ;;  %p859_p8 = scmp.lt.u32.totalorder %s215_s14, %s1364_s2 }
  0xa5   : > { %p857_p6 = scmp.ne.s32.totalorder %s215_s14, %s856_s10  ;;  %p860_p9 = scmp.lt.u32.totalorder %s1201_s28, %s856_s10 }
  0xa6   : > { %p862_p12 = scmp.lt.u32.totalorder %s856_s10, %s215_s14 }
  0xa7   : > { %p861_p10 = por %p860_p9, %p859_p8 }
  0xa9   : > { %p863_p1 = por %p862_p12, %p861_p10 }
  0xab   : > { %p864_p3 = pnand %p863_p1, %p857_p6 }
  0xad   : > { %867 = shalt.err (!%p864_p3)  }
  0xae   : > { %s868_s9 = scalar_lea.vmem %s1252_s1, 16  ;;  %p873_p7 = scmp.lt.s32.totalorder %s1252_s1, %s1186_s11 }
  0xaf   : > { %p869_p5 = scmp.ne.s32.totalorder %s1252_s1, %s868_s9  ;;  %p874_p11 = scmp.lt.s32.totalorder %s1210_s13, %s868_s9 }
  0xb1   : > { %p875_p13 = por %p874_p11, %p873_p7 }
  0xb3   : > { %p876_p0 = pnand %p875_p13, %p869_p5 }
  0xb5   : > { %879 = shalt.err (!%p876_p0)  }
  0xb6   : > { %227 = dma.hbm_to_vmem [thread:$0]  %s215_s14, 16, %s1252_s1, [#allocation3] }
  0xb7   : > { %s246_s20 = sadd.s32 6, %s1178_s30  ;;  %s622_s15 = sshll.u32 %s1257_s29, 4 }
  0xb8   : > { %s247_s18 = sld [smem:[#allocation5 + %s246_s20]]  ;;  %s232_s21 = scalar_lea.hbm %s1364_s2, %s622_s15 }
  0xb9   : > { %s880_s8 = scalar_lea.hbm %s232_s21, 16  ;;  %p883_p4 = scmp.lt.u32.totalorder %s232_s21, %s1364_s2 }
  0xba   : > { %p881_p2 = scmp.ne.s32.totalorder %s232_s21, %s880_s8  ;;  %p884_p6 = scmp.lt.u32.totalorder %s1201_s28, %s880_s8 }
  0xbb   : > { %p886_p9 = scmp.lt.u32.totalorder %s880_s8, %s232_s21 }
  0xbc   : > { %p885_p8 = por %p884_p6, %p883_p4 }
  0xbe   : > { %p887_p10 = por %p886_p9, %p885_p8 }
  0xc0   : > { %p888_p12 = pnand %p887_p10, %p881_p2 }
  0xc2   : > { %891 = shalt.err (!%p888_p12)  }
  0xc3   : > { %s892_s1 = scalar_lea.vmem %s242_s0, 16  ;;  %p897_p3 = scmp.lt.s32.totalorder %s242_s0, %s1186_s11 }
  0xc4   : > { %p893_p1 = scmp.ne.s32.totalorder %s242_s0, %s892_s1  ;;  %p898_p5 = scmp.lt.s32.totalorder %s1210_s13, %s892_s1 }
  0xc6   : > { %p899_p7 = por %p898_p5, %p897_p3 }
  0xc8   : > { %p900_p11 = pnand %p899_p7, %p893_p1 }
  0xca   : > { %903 = shalt.err (!%p900_p11)  }
  0xcb   : > { %244 = dma.hbm_to_vmem [thread:$0]  %s232_s21, 16, %s242_s0, [#allocation3] }
  0xcc   : > { %s1048_s29 = smov [#allocation2 + $0x6]   ;;  %s263_s12 = sadd.s32 7, %s1178_s30 }
  0xcd   : > { %s258_s14 = sshll.u32 %s1048_s29, 4  ;;  %s264_s17 = sld [smem:[#allocation5 + %s263_s12]]  ;;  %s259_s14 = int_to_ptr.vmem [resolvable:$true] %s258_s14 }
  0xce   : > { %s623_s9 = sshll.u32 %s247_s18, 4  ;;  %s1049_s20 = smov [#allocation2 + $0x7]  }
  0xcf   : > { %s275_s15 = sshll.u32 %s1049_s20, 4  ;;  %s249_s8 = scalar_lea.hbm %s1364_s2, %s623_s9  ;;  %s276_s15 = int_to_ptr.vmem [resolvable:$true] %s275_s15 }
  0xd0   : > { %s904_s26 = scalar_lea.hbm %s249_s8, 16  ;;  %p907_p0 = scmp.lt.u32.totalorder %s249_s8, %s1364_s2 }
  0xd1   : > { %p905_p13 = scmp.ne.s32.totalorder %s249_s8, %s904_s26  ;;  %p908_p2 = scmp.lt.u32.totalorder %s1201_s28, %s904_s26 }
  0xd2   : > { %p910_p6 = scmp.lt.u32.totalorder %s904_s26, %s249_s8 }
  0xd3   : > { %p909_p4 = por %p908_p2, %p907_p0 }
  0xd5   : > { %p911_p8 = por %p910_p6, %p909_p4 }
  0xd7   : > { %p912_p9 = pnand %p911_p8, %p905_p13 }
  0xd9   : > { %915 = shalt.err (!%p912_p9)  }
  0xda   : > { %s916_s30 = scalar_lea.vmem %s259_s14, 16  ;;  %p921_p12 = scmp.lt.s32.totalorder %s259_s14, %s1186_s11 }
  0xdb   : > { %p917_p10 = scmp.ne.s32.totalorder %s259_s14, %s916_s30  ;;  %p922_p1 = scmp.lt.s32.totalorder %s1210_s13, %s916_s30 }
  0xdd   : > { %p923_p3 = por %p922_p1, %p921_p12 }
  0xdf   : > { %p924_p5 = pnand %p923_p3, %p917_p10 }
  0xe1   : > { %927 = shalt.err (!%p924_p5)  }
  0xe2   : > { %261 = dma.hbm_to_vmem [thread:$0]  %s249_s8, 16, %s259_s14, [#allocation3] }
  0xe3   : > { %s624_s0 = sshll.u32 %s264_s17, 4 }
  0xe4   : > { %s266_s29 = scalar_lea.hbm %s1364_s2, %s624_s0 }
  0xe5   : > { %s928_s12 = scalar_lea.hbm %s266_s29, 16  ;;  %p931_p11 = scmp.lt.u32.totalorder %s266_s29, %s1364_s2 }
  0xe6   : > { %p929_p7 = scmp.ne.s32.totalorder %s266_s29, %s928_s12  ;;  %p932_p13 = scmp.lt.u32.totalorder %s1201_s28, %s928_s12 }
  0xe7   : > { %p934_p2 = scmp.lt.u32.totalorder %s928_s12, %s266_s29 }
  0xe8   : > { %p933_p0 = por %p932_p13, %p931_p11 }
  0xea   : > { %p935_p4 = por %p934_p2, %p933_p0 }
  0xec   : > { %p936_p6 = pnand %p935_p4, %p929_p7 }
  0xee   : > { %939 = shalt.err (!%p936_p6)  }
  0xef   : > { %s940_s14 = scalar_lea.vmem %s276_s15, 16  ;;  %p945_p9 = scmp.lt.s32.totalorder %s276_s15, %s1186_s11 }
  0xf0   : > { %p941_p8 = scmp.ne.s32.totalorder %s276_s15, %s940_s14  ;;  %p946_p10 = scmp.lt.s32.totalorder %s1210_s13, %s940_s14 }
  0xf2   : > { %p947_p12 = por %p946_p10, %p945_p9 }
  0xf4   : > { %p948_p1 = pnand %p947_p12, %p941_p8 }
  0xf6   : > { %951 = shalt.err (!%p948_p1)  }
  0xf7   : > { %278 = dma.hbm_to_vmem [thread:$0]  %s266_s29, 16, %s276_s15, [#allocation3] }
  0xf8   : > { %s127_s17 = scalar_lea.vmem [#allocation9], %s1182_s5 }
  0xf9   : > { %1010 = dma.done.wait [#allocation3], 128 }
  0xfa   : > { %1011 = vsyncadd [#allocation3], 4294967168  ;;  %s642_s28 = sshll.u32 %s1030_s25, 7  ;;  %s460_s19 = sshll.u32 %s127_s17, 4  ;;  %v440_v0 = vld [vmem:[#allocation2] sm:$0xff]  ;;  %v442_v1 = vld [vmem:[#allocation6] sm:$0xff]  ;;  %s1315_s19 = int_to_ptr.vmem [resolvable:$true] %s460_s19 }
  0xfb   : > { %v443_v2 = vadd.f32 %v442_v1, %v440_v0  ;;  %s1313_s11 = scalar_lea.hbm %s1365_s3, %s642_s28  ;;  %s1384_s5 = sand.u32 1, %s1022_s23  }
  0xfc   : > { %s446_s13 = scalar_lea.sflag [#allocation8], %s1384_s5  ;;  %s952_s15 = scalar_lea.vmem %s1315_s19, 128 }
  0xfd   : > { %444 = vst [vmem:[%s127_s17] sm:$0xff] %v443_v2  ;;  %p953_p3 = scmp.ne.s32.totalorder %s1315_s19, %s952_s15  ;;  %p1385_p5 = scmp.ne.s32.totalorder %s1376_s4, 0 }
  0xfe   : > { %s1050_s25 = smov [#allocation9]  }
  0xff   : > { %p954_p7 = pnand %p953_p3, %p1385_p5  ;;  %s956_s26 = sshll.u32 %s1050_s25, 4  ;;  %s957_s26 = int_to_ptr.vmem [resolvable:$false] %s956_s26 }
 0x100   : > { %s958_s10 = scalar_lea.vmem %s957_s26, 256  ;;  %p959_p13 = scmp.lt.s32.totalorder %s1315_s19, %s957_s26 }
 0x101   : > { %p955_p11 = pneg %p954_p7  ;;  %p960_p0 = scmp.lt.s32.totalorder %s958_s10, %s952_s15 }
 0x103   : > { %p961_p2 = por %p960_p0, %p959_p13 }
 0x105   : > { %p962_p4 = pnand %p961_p2, %p955_p11 }
 0x107   : > { %965 = shalt.err (!%p962_p4)
}
 0x108   : > { %s966_s1 = scalar_lea.hbm %s1313_s11, 128  ;;  %s970_s18 = scalar_lea.hbm %s1365_s3, 256 }
 0x109   : > { %p967_p6 = scmp.ne.s32.totalorder %s1313_s11, %s966_s1  ;;  %p971_p10 = scmp.lt.u32.totalorder %s1313_s11, %s1365_s3 }
 0x10a   : > { %p972_p12 = scmp.lt.u32.totalorder %s970_s18, %s966_s1  ;;  %p974_p3 = scmp.lt.u32.totalorder %s966_s1, %s1313_s11 }
 0x10b   : > { %p968_p8 = pnand %p967_p6, %p1385_p5 }
 0x10c   : > { %p973_p1 = por %p972_p12, %p971_p10 }
 0x10d   : > { %p969_p9 = pneg %p968_p8 }
 0x10e   : > { %p975_p7 = por %p974_p3, %p973_p1 }
 0x110   : > { %p976_p11 = pnand %p975_p7, %p969_p9 }
 0x112   : > { %979 = shalt.err (!%p976_p11)
}
 0x113   : > { %651 = dma.vmem_to_hbm [thread:$0]  (%p1385_p5), %s1315_s19, 128, %s1313_s11, %s446_s13  }
 0x114 PF: > { %p663_p13 = scmp.ge.s32.totalorder %s1038_s27, 2  ;;  %s472_s12 = sand.u32 1, %s1018_s22  }
 0x115   : > { %p1386_p0 = scmp.ne.s32.totalorder %s1377_s6, 0  ;;  %s473_s9 = scalar_lea.sflag [#allocation8], %s472_s12 }
 0x117   : > { %p658_p2 = pnand %p663_p13, %p1386_p0 }
 0x119   : > { %1013 = dma.done.wait (!%p658_p2), %s473_s9, 128  }
 0x11a   : > { %1015 = vsyncadd (!%p658_p2), %s473_s9, 4294967168  ;;  %s21_s27 = sadd.s32 1, %s1038_s27   ;;  %s1387_s25 = sld [smem:[#allocation48_spill]] }
 0x11b   : > { %p18_p4 = scmp.ge.s32.totalorder %s21_s27, 4   ;;  %s1388_s26 = sld [smem:[#allocation49_spill]] }
 0x11c   : > { %s1389_s22 = smov %s1022_s23  ;;  %s1390_s23 = smov %s1026_s24 }
 0x11d   : > { %s1391_s24 = smov %s1136_s7  ;;  %20 = sbr.rel (!%p18_p4) target bundleno = 17 (0x11), region = 169 }
 0x124   :  { %478 = vsyncpa [#allocation7], 1 }
 0x125   :  { %480 = vsyncpa [#allocation7 + $0x1], 1 }
 0x126   :  { %481 = vsyncpa [#allocation8], 1 }
 0x127   :  { %483 = vsyncpa [#allocation8 + $0x1], 1 }
 0x128   :  { %484 = vsyncmov [#allocation3] }
 0x12b   :  { %s485_s4 = vpop.sfrf %484 }
 0x12c   :  { %p645_p5 = scmp.ne.s32.totalorder %s485_s4, 0 }
 0x12e   :  { %489 = shalt.err (%p645_p5)  }
 0x12f   :  { %491 = vsyncmov [#allocation3 + $0x1] }
 0x132   :  { %s492_s6 = vpop.sfrf %491 }
 0x133   :  { %p646_p6 = scmp.ne.s32.totalorder %s492_s6, 0 }
 0x135   :  { %496 = shalt.err (%p646_p6)  }

</bundles_post_ra>
